<compile_context>
chip_gen: v6e
topology: v6e:2x2x1
jax: 0.10.0
libtpu: 0.0.40
codegen_flags: <defaults>
</compile_context>

<pallas_src>
import jax
import jax.numpy as jnp
from jax.experimental import pallas as pl
from jax.experimental.pallas import tpu as pltpu


# ----------------------------- kernels --------------------------------------


def _ffwd_resident_kernel(x_ref, w1_ref, b1_ref, w2_ref, b2_ref, o_ref):
    """Whole FFN; W1/W2/b1/b2 blocks are constant across the row grid."""
    cdt = w1_ref.dtype                      # MXU operand dtype (bf16 recommended)
    x = x_ref[...].astype(cdt)
    # (tm, C) @ (C, H) on the MXU, f32 accumulate, f32 bias, ReLU.
    h = jnp.dot(x, w1_ref[...], preferred_element_type=jnp.float32)
    h = jnp.maximum(h + b1_ref[...], 0.0)
    # (tm, H) @ (H, C), f32 accumulate, f32 bias, single downcast on store.
    y = jnp.dot(h.astype(cdt), w2_ref[...], preferred_element_type=jnp.float32)
    o_ref[...] = (y + b2_ref[...]).astype(o_ref.dtype)


def _ffwd_htiled_kernel(x_ref, w1_ref, b1_ref, w2_ref, b2_ref, o_ref, acc_ref):
    """Streaming fallback: hidden dim tiled on the trailing 'arbitrary' axis."""
    j = pl.program_id(1)

    @pl.when(j == 0)
    def _init():
        acc_ref[...] = jnp.zeros_like(acc_ref)

    cdt = w1_ref.dtype
    x = x_ref[...].astype(cdt)
    h = jnp.dot(x, w1_ref[...], preferred_element_type=jnp.float32)
    h = jnp.maximum(h + b1_ref[...], 0.0)
    acc_ref[...] += jnp.dot(h.astype(cdt), w2_ref[...],
                            preferred_element_type=jnp.float32)

    @pl.when(j == pl.num_programs(1) - 1)
    def _finalize():
        # b2 added exactly once, single downcast.
        o_ref[...] = (acc_ref[...] + b2_ref[...]).astype(o_ref.dtype)


# ----------------------------- planning -------------------------------------


def _round_up(x, m):
    return pl.cdiv(x, m) * m


def _vmem_capacity_bytes():
    try:
        cap = getattr(pltpu.get_tpu_info(), "vmem_capacity_bytes", None)
        if cap:
            return int(cap)
    except Exception:
        pass
    return 64 << 20        # conservative fallback: v7x per-TensorCore VMEM


def _resident_footprint(tm, C, H, isz_in, isz_w):
    """VMEM bytes for the weights-resident layout (weights single-buffered)."""
    return (2 * C * H * isz_w              # W1 + W2, pl.Buffered(1)
            + (H + C) * 4                  # f32 biases, pl.Buffered(1)
            + 2 * tm * C * isz_in          # x row tile (double-buffered)
            + 2 * tm * C * isz_in          # out row tile (double-buffered)
            + tm * H * 4 + tm * H * isz_w  # f32 intermediate h + compute-dtype cast
            + tm * C * 4)                  # f32 second-matmul result


def _htiled_footprint(tm, th, C, isz_in, isz_w):
    """VMEM bytes for the H-tiled streaming layout."""
    return (2 * 2 * C * th * isz_w         # W1/W2 slabs (double-buffered, streamed)
            + 2 * (th + C) * 4             # f32 biases
            + 2 * tm * C * isz_in          # x row tile
            + 2 * tm * C * isz_in          # out row tile
            + tm * C * 4                   # f32 accumulator scratch
            + tm * th * 4 + tm * th * isz_w  # f32 intermediate h + cast
            + tm * C * 4)


def _choose_plan(M, C, H, isz_in, isz_w, pack, budget,
                 force_resident=None, tm_user=None, th_user=None):
    """Pick layout + tiles. Returns (resident, tile_m, tile_h, vmem_footprint)."""

    def rows_for(target):
        if tm_user is not None:
            return max(_round_up(tm_user, pack), pack)
        if M <= target:
            # Split small M into >=2 row tiles (when more than one sublane group)
            # so the "parallel" row axis can shard across both v7x TensorCores.
            return max(_round_up(pl.cdiv(M, 2), pack), pack)
        return target

    # Preferred: weights resident in VMEM -> W1/W2 DMA'd exactly once.
    if force_resident is not False:
        targets = (tm_user,) if tm_user is not None else (1024, 512, 256, 128)
        for target in targets:
            tile_m = rows_for(target)
            foot = _resident_footprint(tile_m, C, H, isz_in, isz_w)
            if foot <= budget or (force_resident is True and target == targets[-1]):
                return True, tile_m, H, foot
        # nothing fit and residency not forced -> fall through to streaming.

    # Fallback: stream W1/W2 as (C, th)/(th, C) slabs along a trailing
    # "arbitrary" H axis with an f32 VMEM accumulator.
    tile_m = rows_for(512)
    if th_user is not None:
        tile_h = th_user
    else:
        cands = [c for c in (H, 4096, 2048, 1024, 512, 256, 128) if H % c == 0]
        tile_h = cands[-1]
        for c in cands:                     # largest slab that fits the budget
            if _htiled_footprint(tile_m, c, C, isz_in, isz_w) <= budget:
                tile_h = c
                break
    return False, tile_m, tile_h, _htiled_footprint(tile_m, tile_h, C, isz_in, isz_w)


# ----------------------------- wrapper ---------------------------------------


def feed_forward(x, w1, b1, w2, b2, *, compute_dtype=jnp.bfloat16,
                 weights_resident=None, tm=None, th=None):
    """x: (B, T, C) -> (B, T, C). Fused Linear + ReLU + Linear (+ eval Dropout).

    compute_dtype: MXU operand dtype (accumulation is always f32). bf16 gives
      full MXU rate on v5e/v6e/v7x; pass jnp.float32 for strict numerics.
    weights_resident: True/False forces the layout; None = auto from VMEM budget.
    """
    B, T, C = x.shape
    H = w1.shape[1]
    assert w1.shape == (C, H) and w2.shape == (H, C)

    in_dtype = x.dtype
    cdt = jnp.dtype(compute_dtype)
    isz_in = jnp.dtype(in_dtype).itemsize
    isz_w = cdt.itemsize
    pack = 16 if in_dtype == jnp.bfloat16 else 8

    # Cast weights once in the wrapper (not per grid step); biases stay f32 so
    # bias adds happen at accumulator precision.
    w1c = w1 if w1.dtype == cdt else w1.astype(cdt)
    w2c = w2 if w2.dtype == cdt else w2.astype(cdt)
    b1f = b1.reshape(1, H).astype(jnp.float32)
    b2f = b2.reshape(1, C).astype(jnp.float32)

    M = B * T
    x2 = x.reshape(M, C)

    # VMEM budget: ~70% of per-core capacity (64 MiB v7x, 128 MiB v5e/v6e).
    cap = _vmem_capacity_bytes()
    budget = min(int(cap * 0.70), 96 << 20)

    resident, tile_m, tile_h, foot = _choose_plan(
        M, C, H, isz_in, isz_w, pack, budget,
        force_resident=weights_resident, tm_user=tm, th_user=th)

    grid_m = pl.cdiv(M, tile_m)
    Mp = grid_m * tile_m
    if Mp != M:
        x2 = jnp.pad(x2, ((0, Mp - M), (0, 0)))   # padded rows sliced off below

    vmem_limit = int(foot * 1.4) + (2 << 20)
    vmem_limit = max(16 << 20, min(vmem_limit, int(cap * 0.9)))

    weight_bytes = 2 * C * H * isz_w + (H + C) * 4
    cost = pl.CostEstimate(
        flops=4 * M * C * H,                       # two matmuls, 2*M*K*N each
        transcendentals=0,
        bytes_accessed=int(2 * M * C * isz_in
                           + (1 if resident else grid_m) * weight_bytes))

    if resident:
        grid = (grid_m,)
        in_specs = [
            pl.BlockSpec((tile_m, C), lambda i: (i, 0)),                          # x rows
            pl.BlockSpec((C, H), lambda i: (0, 0), pipeline_mode=pl.Buffered(1)),  # W1
            pl.BlockSpec((1, H), lambda i: (0, 0), pipeline_mode=pl.Buffered(1)),  # b1
            pl.BlockSpec((H, C), lambda i: (0, 0), pipeline_mode=pl.Buffered(1)),  # W2
            pl.BlockSpec((1, C), lambda i: (0, 0), pipeline_mode=pl.Buffered(1)),  # b2
        ]
        out_spec = pl.BlockSpec((tile_m, C), lambda i: (i, 0))
        scratch = ()
        kernel = _ffwd_resident_kernel
        dims = ("parallel",)
    else:
        assert H % tile_h == 0, (H, tile_h)
        grid = (grid_m, H // tile_h)                # reduction (H) axis last
        in_specs = [
            pl.BlockSpec((tile_m, C), lambda i, j: (i, 0)),                        # x rows
            pl.BlockSpec((C, tile_h), lambda i, j: (0, j)),                        # W1 slab
            pl.BlockSpec((1, tile_h), lambda i, j: (0, j)),                        # b1 slab
            pl.BlockSpec((tile_h, C), lambda i, j: (j, 0)),                        # W2 slab
            pl.BlockSpec((1, C), lambda i, j: (0, 0), pipeline_mode=pl.Buffered(1)),  # b2
        ]
        out_spec = pl.BlockSpec((tile_m, C), lambda i, j: (i, 0))
        scratch = (pltpu.VMEM((tile_m, C), jnp.float32),)
        kernel = _ffwd_htiled_kernel
        dims = ("parallel", "arbitrary")

    out2 = pl.pallas_call(
        kernel,
        out_shape=jax.ShapeDtypeStruct((Mp, C), in_dtype),
        grid_spec=pltpu.PrefetchScalarGridSpec(
            num_scalar_prefetch=0,
            grid=grid,
            in_specs=in_specs,
            out_specs=out_spec,
            scratch_shapes=scratch),
        compiler_params=pltpu.CompilerParams(
            dimension_semantics=dims,
            vmem_limit_bytes=vmem_limit),
        cost_estimate=cost,
    )(x2, w1c, b1f, w2c, b2f)

    return out2[:M].reshape(B, T, C)


# ----------------------------- reference & init ------------------------------


def feed_forward_ref(x, w1, b1, w2, b2):
    B, T, C = x.shape
    h = jnp.maximum(x.reshape(-1, C) @ w1 + b1.reshape(1, -1), 0.0)
    y = h @ w2 + b2.reshape(1, -1)
    return y.reshape(B, T, C)


def init_params(key, n_embd, dtype=jnp.float32):
    """Deterministic init mimicking nn.Linear default (uniform +- 1/sqrt(fan_in))."""
    h = 4 * n_embd
    k1, k2, k3, k4 = jax.random.split(key, 4)
    lim1 = 1.0 / (n_embd ** 0.5)
    lim2 = 1.0 / (h ** 0.5)
    w1 = jax.random.uniform(k1, (n_embd, h), dtype, -lim1, lim1)
    b1 = jax.random.uniform(k2, (1, h), dtype, -lim1, lim1)
    w2 = jax.random.uniform(k3, (h, n_embd), dtype, -lim2, lim2)
    b2 = jax.random.uniform(k4, (1, n_embd), dtype, -lim2, lim2)
    return w1, b1, w2, b2


if __name__ == "__main__":
    key = jax.random.PRNGKey(0)

    # --- small demo (n_embd=32 -> hidden=128), f32 params --------------------
    B, T, C = 2, 8, 32
    kx, kp = jax.random.split(key)
    x = jax.random.normal(kx, (B, T, C), jnp.float32)
    w1, b1, w2, b2 = init_params(kp, C, jnp.float32)
    ref = feed_forward_ref(x, w1, b1, w2, b2)

    # strict f32 MXU operands (tight check of the fused structure)
    out_f32 = jax.block_until_ready(
        jax.jit(lambda *a: feed_forward(*a, compute_dtype=jnp.float32))(
            x, w1, b1, w2, b2))
    assert out_f32.shape == (B, T, C) and out_f32.dtype == jnp.float32
    assert jnp.allclose(out_f32, ref, atol=1e-5, rtol=1e-5)

    # default path: bf16 MXU operands + f32 accumulation (full MXU rate)
    out_def = jax.block_until_ready(jax.jit(feed_forward)(x, w1, b1, w2, b2))
    assert out_def.shape == (B, T, C)
    assert jnp.allclose(out_def, ref, atol=2e-2, rtol=2e-2)

    # --- larger case: row-tile split/padding (M=270) with H=1024 -------------
    B2, T2, C2 = 2, 135, 256
    kx2, kp2 = jax.random.split(jax.random.PRNGKey(1))
    xl = jax.random.normal(kx2, (B2, T2, C2), jnp.float32)
    p2 = init_params(kp2, C2, jnp.float32)
    refl = feed_forward_ref(xl, *p2)

    outl = jax.block_until_ready(jax.jit(feed_forward)(xl, *p2))   # resident path
    assert outl.shape == (B2, T2, C2)
    assert jnp.allclose(outl, refl, atol=2e-2, rtol=2e-2)

    # forced H-tiled streaming fallback (the weights-too-large / v7x-over-budget
    # path), f32 operands for a tighter structural check of the accumulator loop.
    f_tiled = jax.jit(lambda *a: feed_forward(
        *a, compute_dtype=jnp.float32, weights_resident=False, th=256))
    outt = jax.block_until_ready(f_tiled(xl, *p2))
    assert jnp.allclose(outt, refl, atol=2e-2, rtol=2e-2)

    # --- bf16 end-to-end (operands, params, output) --------------------------
    xb = x.astype(jnp.bfloat16)
    pb = tuple(p.astype(jnp.bfloat16) for p in (w1, b1, w2, b2))
    outb = jax.block_until_ready(jax.jit(feed_forward)(xb, *pb))
    assert outb.shape == (B, T, C) and outb.dtype == jnp.bfloat16
    assert jnp.allclose(outb.astype(jnp.float32), ref, atol=8e-2, rtol=8e-2)

    print("KERNEL_OK")
</pallas_src>

<mosaic_0001>
module attributes {stable_mosaic.version = 11 : i64} {
  func.func @_ffwd_resident_kernel(%arg0: i32, %arg1: memref<8x32xf32, #tpu.memory_space<vmem>>, %arg2: memref<32x128xf32, #tpu.memory_space<vmem>>, %arg3: memref<1x128xf32, #tpu.memory_space<vmem>>, %arg4: memref<128x32xf32, #tpu.memory_space<vmem>>, %arg5: memref<1x32xf32, #tpu.memory_space<vmem>>, %arg6: memref<8x32xf32, #tpu.memory_space<vmem>>) attributes {dimension_semantics = [#tpu.dimension_semantics<parallel>], iteration_bounds = array<i64: 2>, scalar_prefetch = 0 : i64, scratch_operands = 0 : i64, tpu.core_type = #tpu.core_type<tc>, window_params = [{transform_indices = @transform_0, window_bounds = array<i64: 8, 32>}, {pipeline_mode = #tpu.pipeline_mode<synchronous>, transform_indices = @transform_1, window_bounds = array<i64: 32, 128>}, {pipeline_mode = #tpu.pipeline_mode<synchronous>, transform_indices = @transform_2, window_bounds = array<i64: 1, 128>}, {pipeline_mode = #tpu.pipeline_mode<synchronous>, transform_indices = @transform_3, window_bounds = array<i64: 128, 32>}, {pipeline_mode = #tpu.pipeline_mode<synchronous>, transform_indices = @transform_4, window_bounds = array<i64: 1, 32>}, {transform_indices = @transform_5, window_bounds = array<i64: 8, 32>}]} {
    %c0 = arith.constant 0 : index
    %c0_0 = arith.constant 0 : index
    %0 = vector.load %arg1[%c0, %c0_0] : memref<8x32xf32, #tpu.memory_space<vmem>>, vector<8x32xf32>
    %c0_1 = arith.constant 0 : index
    %c0_2 = arith.constant 0 : index
    %1 = vector.load %arg2[%c0_1, %c0_2] : memref<32x128xf32, #tpu.memory_space<vmem>>, vector<32x128xf32>
    %cst = arith.constant dense<0.000000e+00> : vector<8x128xf32>
    %2 = tpu.matmul %0, %1, %cst {dimension_numbers = #tpu.dot_dimension_numbers<[1], [0], [0], [1], [0, 0, 1, 1], [], []>} : vector<8x32xf32>, vector<32x128xf32>, vector<8x128xf32> -> vector<8x128xf32>
    %c0_3 = arith.constant 0 : index
    %c0_4 = arith.constant 0 : index
    %3 = vector.load %arg3[%c0_3, %c0_4] : memref<1x128xf32, #tpu.memory_space<vmem>>, vector<1x128xf32>
    %4 = vector.broadcast %3 : vector<1x128xf32> to vector<8x128xf32>
    %5 = arith.addf %2, %4 : vector<8x128xf32>
    %cst_5 = arith.constant 0.000000e+00 : f32
    %6 = vector.broadcast %cst_5 : f32 to vector<8x128xf32>
    %7 = arith.maximumf %5, %6 : vector<8x128xf32>
    %c0_6 = arith.constant 0 : index
    %c0_7 = arith.constant 0 : index
    %8 = vector.load %arg4[%c0_6, %c0_7] : memref<128x32xf32, #tpu.memory_space<vmem>>, vector<128x32xf32>
    %cst_8 = arith.constant dense<0.000000e+00> : vector<8x32xf32>
    %9 = tpu.matmul %7, %8, %cst_8 {dimension_numbers = #tpu.dot_dimension_numbers<[1], [0], [0], [1], [0, 0, 1, 1], [], []>} : vector<8x128xf32>, vector<128x32xf32>, vector<8x32xf32> -> vector<8x32xf32>
    %c0_9 = arith.constant 0 : index
    %c0_10 = arith.constant 0 : index
    %10 = vector.load %arg5[%c0_9, %c0_10] : memref<1x32xf32, #tpu.memory_space<vmem>>, vector<1x32xf32>
    %11 = vector.broadcast %10 : vector<1x32xf32> to vector<8x32xf32>
    %12 = arith.addf %9, %11 : vector<8x32xf32>
    %c0_11 = arith.constant 0 : index
    %c0_12 = arith.constant 0 : index
    %13 = vector.load %arg6[%c0_11, %c0_12] : memref<8x32xf32, #tpu.memory_space<vmem>>, vector<8x32xf32>
    tpu.vector_store %arg6[%c0_11, %c0_12], %12 {strides = array<i32>} : memref<8x32xf32, #tpu.memory_space<vmem>>, vector<8x32xf32>,
    return
  }
  func.func @transform_0(%arg0: i32) -> (i32, i32) {
    %c0_i32 = arith.constant 0 : i32
    %c0_i32_0 = arith.constant 0 : i32
    return %arg0, %c0_i32 : i32, i32
  }
  func.func @transform_1(%arg0: i32) -> (i32, i32) {
    %c0_i32 = arith.constant 0 : i32
    %c0_i32_0 = arith.constant 0 : i32
    %c0_i32_1 = arith.constant 0 : i32
    return %c0_i32, %c0_i32_0 : i32, i32
  }
  func.func @transform_2(%arg0: i32) -> (i32, i32) {
    %c0_i32 = arith.constant 0 : i32
    %c0_i32_0 = arith.constant 0 : i32
    %c0_i32_1 = arith.constant 0 : i32
    return %c0_i32, %c0_i32_0 : i32, i32
  }
  func.func @transform_3(%arg0: i32) -> (i32, i32) {
    %c0_i32 = arith.constant 0 : i32
    %c0_i32_0 = arith.constant 0 : i32
    %c0_i32_1 = arith.constant 0 : i32
    return %c0_i32, %c0_i32_0 : i32, i32
  }
  func.func @transform_4(%arg0: i32) -> (i32, i32) {
    %c0_i32 = arith.constant 0 : i32
    %c0_i32_0 = arith.constant 0 : i32
    %c0_i32_1 = arith.constant 0 : i32
    return %c0_i32, %c0_i32_0 : i32, i32
  }
  func.func @transform_5(%arg0: i32) -> (i32, i32) {
    %c0_i32 = arith.constant 0 : i32
    %c0_i32_0 = arith.constant 0 : i32
    return %arg0, %c0_i32 : i32, i32
  }
}

</mosaic_0001>

<bundles_post_ra>
// kernel: _lambda_.1
= control target key start
LH: loop header
LB: loop body
LE: loop exit
PB: predicated region body
PF: predicated region fallthrough
CT: control target
= control target key end

     0   :  { %10 = vsyncpa [#allocation3], 0  ;;  %s876_s0 = inlined_call_operand.vmem [shape: f32[16,32], index: 0, kind: input, shape index: {}]   ;;  %s877_s1 = inlined_call_operand.vmem [shape: f32[32,128], index: 1, kind: input, shape index: {}]   ;;  %s878_s2 = inlined_call_operand.vmem [shape: f32[1,128], index: 2, kind: input, shape index: {}]   ;;  %s879_s3 = inlined_call_operand.vmem [shape: f32[128,32], index: 3, kind: input, shape index: {}]   ;;  %s880_s4 = inlined_call_operand.vmem [shape: f32[1,32], index: 4, kind: input, shape index: {}]   ;;  %s881_s5 = inlined_call_operand.hbm [shape: f32[16,32], index: 5, kind: output, shape index: {}]  }
   0x1   :  { %12 = vsyncpa [#allocation3 + $0x1], 0  ;;  %s691_s18 = smov 0   ;;  %s693_s19 = smov 0  }
   0x2   :  { %s695_s20 = smov 0   ;;  %s697_s21 = smov 0  }
   0x3 LB: > { %s712_s22 = sadd.s32 4294967295, %s656_s21   ;;  %s474_s23 = sadd.s32 4294967294, %s656_s21   ;;  %s656_s21 = sphi %s697_s21, %s887_s21   ;;  %s652_s20 = sphi %s695_s20, %s886_s20   ;;  %s648_s19 = sphi %s693_s19, %s885_s19   ;;  %s644_s18 = sphi %s691_s18, %s884_s18  }
   0x4   : > { %s716_s24 = sadd.s32 1, %s656_s21   ;;  %s135_s25 = sadd.s32 1, %s652_s20 }
   0x5   : > { %s132_s26 = ssub.s32 %s656_s21, %s716_s24  ;;  %p145_p0 = scmp.ne.s32.totalorder %s652_s20, %s648_s19 }
   0x6   : > { %p133_p1 = scmp.eq.s32.totalorder %s132_s26, 0  ;;  %p146_p2 = scmp.eq.s32.totalorder %s712_s22, 1 }
   0x7   : > { %p151_p3 = scmp.ne.s32.totalorder %s648_s19, %s644_s18  ;;  %p152_p4 = scmp.eq.s32.totalorder %s474_s23, 1 }
   0x8   : > { %s727_s27 = scalar_select %p133_p1, %s652_s20, %s135_s25  }
   0x9   : > { %p729_p5 = por %p146_p2, %p145_p0  ;;  %p733_p6 = por %p152_p4, %p151_p3 }
   0xa   : > { %p477_p7 = scmp.ge.s32.totalorder %s656_s21, 1  ;;  %p189_p8 = scmp.lt.s32.totalorder %s656_s21, 3 }
   0xc   : > { %p190_p9 = pnand %p477_p7, %p189_p8 }
   0xd   : > { %p216_p10 = scmp.lt.s32.totalorder (!%p190_p9), %s712_s22, 1  ;;  %s213_s26 = sand.u32 (!%p190_p9), 1, %s648_s19  }
   0xe   : > { %193 = sbr.rel (%p190_p9) target bundleno = 433 (0x1b1), region = 40  ;;  %s478_s30 = sshll.u32 (!%p190_p9), %s213_s26, 3 }
   0xf   : > { %s484_s8 = sshll.u32 (!%p190_p9), %s712_s22, 7  ;;  %s215_s9 = scalar_lea.vmem (!%p190_p9), [#allocation2], %s478_s30 }
  0x10   : > { %s415_s10 = sshll.u32 (!%p190_p9), %s215_s9, 4  ;;  %s840_s13 = scalar_lea.hbm (!%p190_p9), %s881_s5, %s484_s8  ;;  %s416_s10 = int_to_ptr.vmem [resolvable:$true] %s415_s10 }
  0x11   : > { %s402_s14 = scalar_lea.sflag (!%p190_p9), [#allocation3], %s213_s26  ;;  %s596_s15 = scalar_lea.vmem (!%p190_p9), %s416_s10, 128 }
  0x12   : > { %p597_p11 = scmp.ne.s32.totalorder (!%p190_p9), %s416_s10, %s596_s15 }
  0x13   : > { %v224_v0 = vld [vmem:[%s877_s1 + $0x18] sm:$0xff]  ;;  %v658_v1 = vmov 0.0   ;;  %v223_v2 = vld [vmem:[%s877_s1 + $0x10] sm:$0xff]  ;;  %vm659_vm0 = vmmov 0   ;;  %s217_s11 = scalar_select %p216_p10, %s712_s22, 1  ;;  %v222_v5 = vld [vmem:[%s877_s1 + $0x8] sm:$0xff] }
  0x14   : > { %509 = vmatprep.subr.mxu0 %v658_v1  ;;  %517 = vmatprep.mubr.msk.f32.mxu0 %vm659_vm0, %v658_v1  ;;  %v322_v3 = vld [vmem:[%s879_s3 + $0x78] sm:$0xff]  ;;  %v321_v4 = vld [vmem:[%s879_s3 + $0x70] sm:$0xff]  ;;  %v320_v6 = vld [vmem:[%s879_s3 + $0x68] sm:$0xff]  ;;  %vm232_vm1 = vcmask 261120   ;;  %p598_p12 = pnand %p597_p11, %p729_p5  ;;  %s660_s22 = smov [#allocation2]  }
  0x15   : > { %510 = vmatpush3.msra.mxu0 %v224_v0  ;;  %520 = vmatprep.subr.mxu1 %v658_v1  ;;  %s479_s16 = sshll.u32 %s217_s11, 3  ;;  %v221_v7 = vld [vmem:[%s877_s1] sm:$0xff]  ;;  %v318_v10 = vld [vmem:[%s879_s3 + $0x58] sm:$0xff]  ;;  %v317_v11 = vld [vmem:[%s879_s3 + $0x50] sm:$0xff] }
  0x16   : > { %511 = vmatprep.subr.mxu0 %v658_v1  ;;  %521 = vmatpush3.msra.mxu1 %v322_v3  ;;  %s219_s7 = scalar_lea.vmem %s876_s0, %s479_s16  ;;  %v319_v9 = vld [vmem:[%s879_s3 + $0x60] sm:$0xff]  ;;  %v316_v12 = vld [vmem:[%s879_s3 + $0x48] sm:$0xff]  ;;  %v314_v14 = vld [vmem:[%s879_s3 + $0x38] sm:$0xff]  ;;  %p599_p13 = pneg %p598_p12 }
  0x17   : > { %512 = vmatpush3.msra.mxu0 %v223_v2  ;;  %522 = vmatprep.subr.mxu1 %v658_v1  ;;  %v220_v8 = vld [vmem:[%s219_s7] sm:$0xff]  ;;  %v313_v15 = vld [vmem:[%s879_s3 + $0x30] sm:$0xff]  ;;  %v312_v16 = vld [vmem:[%s879_s3 + $0x28] sm:$0xff]  ;;  %s600_s16 = sshll.u32 %s660_s22, 4  ;;  %s601_s16 = int_to_ptr.vmem [resolvable:$false] %s600_s16 }
  0x18   : > { %513 = vmatprep.subr.mxu0 %v658_v1  ;;  %523 = vmatpush3.msra.mxu1 %v321_v4  ;;  %v315_v13 = vld [vmem:[%s879_s3 + $0x40] sm:$0xff]  ;;  %v310_v18 = vld [vmem:[%s879_s3 + $0x18] sm:$0xff]  ;;  %v309_v19 = vld [vmem:[%s879_s3 + $0x10] sm:$0xff]  ;;  %s602_s17 = scalar_lea.vmem %s601_s16, 256  ;;  %p603_p0 = scmp.lt.s32.totalorder %s416_s10, %s601_s16 }
  0x19   : > { %514 = vmatpush3.msra.mxu0 %v222_v5  ;;  %524 = vmatprep.subr.mxu1 %v658_v1  ;;  %v311_v17 = vld [vmem:[%s879_s3 + $0x20] sm:$0xff]  ;;  %v308_v20 = vld [vmem:[%s879_s3 + $0x8] sm:$0xff]  ;;  %p604_p1 = scmp.lt.s32.totalorder %s602_s17, %s596_s15 }
  0x1a   : > { %515 = vmatprep.subr.mxu0 %v658_v1  ;;  %525 = vmatpush3.msra.mxu1 %v320_v6  ;;  %v307_v21 = vld [vmem:[%s879_s3] sm:$0xff] }
  0x1b   : > { %516 = vmatpush3.msra.mxu0 %v221_v7  ;;  %526 = vmatprep.subr.mxu1 %v658_v1  ;;  %v480_v22 = vld [vmem:[%s878_s2] ss:$0 sm:$0xff]  ;;  %p605_p2 = por %p604_p1, %p603_p0 }
  0x1c   : > { %518 = vmatmul.mubr.msk.f32.vlgmr.msra.gmra.mxu0 %vm232_vm1, %v220_v8  ;;  %527 = vmatpush3.msra.mxu1 %v319_v9  ;;  %v482_v27 = vld [vmem:[%s880_s4] ss:$0 sm:$0xff] }
  0x1d   : > { %528 = vmatprep.subr.mxu1 %v658_v1  ;;  %552 = vmatprep.mubr.msk.f32.mxu1 %vm659_vm0, %v658_v1  ;;  %p606_p3 = pnand %p605_p2, %p599_p13 }
  0x1e   : > { %529 = vmatpush3.msra.mxu1 %v318_v10 }
  0x1f   : > { %530 = vmatprep.subr.mxu1 %v658_v1 }
  0x20   : > { %531 = vmatpush3.msra.mxu1 %v317_v11 }
  0x21   : > { %532 = vmatprep.subr.mxu1 %v658_v1 }
  0x22   : > { %533 = vmatpush3.msra.mxu1 %v316_v12 }
  0x23   : > { %534 = vmatprep.subr.mxu1 %v658_v1 }
  0x24   : > { %535 = vmatpush3.msra.mxu1 %v315_v13 }
  0x25   : > { %536 = vmatprep.subr.mxu1 %v658_v1 }
  0x26   : > { %537 = vmatpush3.msra.mxu1 %v314_v14 }
  0x27   : > { %538 = vmatprep.subr.mxu1 %v658_v1 }
  0x28   : > { %539 = vmatpush3.msra.mxu1 %v313_v15 }
  0x29   : > { %540 = vmatprep.subr.mxu1 %v658_v1 }
  0x2a   : > { %541 = vmatpush3.msra.mxu1 %v312_v16 }
  0x2b   : > { %542 = vmatprep.subr.mxu1 %v658_v1 }
  0x2c   : > { %543 = vmatpush3.msra.mxu1 %v311_v17 }
  0x2d   : > { %544 = vmatprep.subr.mxu1 %v658_v1 }
  0x2e   : > { %545 = vmatpush3.msra.mxu1 %v310_v18 }
  0x2f   : > { %546 = vmatprep.subr.mxu1 %v658_v1 }
  0x30   : > { %547 = vmatpush3.msra.mxu1 %v309_v19 }
  0x31   : > { %548 = vmatprep.subr.mxu1 %v658_v1 }
  0x32   : > { %549 = vmatpush3.msra.mxu1 %v308_v20 }
  0x33   : > { %550 = vmatprep.subr.mxu1 %v658_v1 }
  0x34   : > { %551 = vmatpush3.msra.mxu1 %v307_v21 }
  0xdc   : > { %v302_v23 = vpop.f32.mrf.mxu0 }
  0xdd   : > { %v303_v24 = vadd.f32 %v480_v22, %v302_v23 }
  0xde   : > { %v519_v25 = vpop.f32.mrf.mxu0 }
  0xdf   : > { %v306_v26 = vmax.f32 %v303_v24, 0.0 }
  0xe1   : > { %553 = vmatmul.mubr.f32.vlgmr.msra.gmra.mxu1 %v306_v26 }
 0x1a1   : > { %v396_v28 = vpop.f32.mrf.mxu1 }
 0x1a2   : > { %v397_v29 = vadd.f32 %v482_v27, %v396_v28 }
 0x1a3   : > { %v554_v30 = vpop.f32.mrf.mxu1 }
 0x1a4   : > { %400 = vst.msk [vmem:[%s215_s9] sm:$0xff] %vm232_vm1, %v397_v29 }
 0x1a5   : > { %609 = shalt.err (!%p606_p3)
}
 0x1a6   : > { %s610_s23 = scalar_lea.hbm %s840_s13, 128  ;;  %s614_s30 = scalar_lea.hbm %s881_s5, 256 }
 0x1a7   : > { %p611_p4 = scmp.ne.s32.totalorder %s840_s13, %s610_s23  ;;  %p615_p9 = scmp.lt.s32.totalorder %s840_s13, %s881_s5 }
 0x1a8   : > { %p616_p10 = scmp.lt.s32.totalorder %s614_s30, %s610_s23 }
 0x1a9   : > { %p612_p7 = pnand %p611_p4, %p729_p5 }
 0x1aa   : > { %p617_p11 = por %p616_p10, %p615_p9 }
 0x1ab   : > { %p613_p8 = pneg %p612_p7 }
 0x1ad   : > { %p618_p12 = pnand %p617_p11, %p613_p8 }
 0x1af   : > { %621 = shalt.err (!%p618_p12)
}
 0x1b0   : > { %555 = dma.vmem_to_hbm [thread:$0]  (%p729_p5), %s416_s10, 128, %s840_s13, %s402_s14  }
 0x1b1 PF: > { %p561_p13 = scmp.ge.s32.totalorder %s656_s21, 2  ;;  %s427_s8 = sand.u32 1, %s644_s18  }
 0x1b2   : > { %s428_s9 = scalar_lea.sflag [#allocation3], %s427_s8 }
 0x1b3   : > { %p558_p0 = pnand %p561_p13, %p733_p6 }
 0x1b5   : > { %p559_p1 = pneg %p558_p0 }
 0x1b7   : > { %639 = dma.done.wait (%p559_p1), %s428_s9, 128  }
 0x1b8   : > { %641 = vsyncadd (%p559_p1), %s428_s9, 4294967168  ;;  %p15_p2 = scmp.ge.s32.totalorder %s716_s24, 4   ;;  %s884_s18 = smov %s648_s19 }
 0x1b9   : > { %s885_s19 = smov %s652_s20  ;;  %s886_s20 = smov %s727_s27 }
 0x1ba   : > { %s887_s21 = smov %s716_s24  ;;  %17 = sbr.rel (!%p15_p2) target bundleno = 3 (0x3), region = 75 }
 0x1bf   :  { %433 = vsyncpa [#allocation3], 1 }
 0x1c0   :  { %435 = vsyncpa [#allocation3 + $0x1], 1 }

</bundles_post_ra>
